<compile_context>
chip_gen: v7x
topology: tpu7x:2x2x1
jax: 0.10.0
libtpu: 0.0.40
codegen_flags: <defaults>
</compile_context>

<pallas_src>
import functools

import jax
import jax.numpy as jnp
from jax.experimental import pallas as pl
from jax.experimental.pallas import tpu as pltpu


def _round_up(x, m):
    return ((x + m - 1) // m) * m


def _sigmoid_smearing_kernel(dist_ref, out_ref, *,
                             half_coeff, half_off_start, half_off_step):
    # dist_ref: (1, 1, TILE_N) VMEM, lane-dense row of distances.
    # out_ref:  (TILE_N, K)    VMEM.
    #
    # sigmoid(coeff*(d - off)) == 0.5*tanh(0.5*coeff*d - 0.5*coeff*off) + 0.5
    k = out_ref.shape[-1]

    # Scale the narrow lane-dense row first (tile/128 vregs of VALU work),
    # then relayout lanes -> sublanes with one cheap XLU transpose.
    d_row = dist_ref[0] * half_coeff                    # (1, TILE_N)
    d_col = jnp.transpose(d_row, (1, 0))                # (TILE_N, 1)

    # Regenerate the half-scaled offsets in-kernel (K elements; trivial VALU).
    k_idx = jax.lax.broadcasted_iota(jnp.int32, (1, k), 1).astype(jnp.float32)
    half_off = half_off_start + half_off_step * k_idx   # (1, K)

    x = d_col - half_off                                 # single wide subtract
    out_ref[...] = (0.5 * jnp.tanh(x) + 0.5).astype(out_ref.dtype)


class SigmoidSmearing:
    """JAX/Pallas port of scdp.model.scn.smearing.SigmoidSmearing."""

    def __init__(self, start=-5.0, stop=5.0, num_sigmoid=50,
                 basis_width_scalar=1.0, tile_n=16384,
                 out_dtype=jnp.float32):
        if num_sigmoid < 2:
            # The PyTorch original indexes offset[1] for the coefficient.
            raise ValueError("num_sigmoid must be >= 2")
        self.num_output = num_sigmoid
        offset = jnp.linspace(start, stop, num_sigmoid, dtype=jnp.float32)
        self.coeff = float(basis_width_scalar / (offset[1] - offset[0]))
        self.offset = offset                              # buffer (parity)
        # Analytic linspace step; offsets are rebuilt in-kernel via iota.
        step = (stop - start) / (num_sigmoid - 1)
        self._half_coeff = 0.5 * self.coeff
        self._half_off_start = self._half_coeff * start
        self._half_off_step = self._half_coeff * step
        self.tile_n = int(tile_n)
        self.out_dtype = out_dtype

    def __call__(self, dist):
        dist_flat = jnp.reshape(dist, (-1,)).astype(jnp.float32)   # (N,)
        n = dist_flat.shape[0]
        k = self.num_output

        # Tile: multiple of 8 (sublane rule for the (tile, K) output block),
        # capped by tile_n.  The ragged last output block is masked by Pallas.
        tile = min(_round_up(self.tile_n, 8), _round_up(n, 8))
        grid = pl.cdiv(n, tile)
        n_pad = grid * tile
        if n_pad != n:
            dist_flat = jnp.pad(dist_flat, (0, n_pad - n))  # pads only dist
        # (G, 1, tile): the last two block dims (1, tile) equal the array
        # dims, so each dist DMA is one contiguous lane-dense burst.
        dist_rows = jnp.reshape(dist_flat, (grid, 1, tile))

        kernel = functools.partial(
            _sigmoid_smearing_kernel,
            half_coeff=self._half_coeff,
            half_off_start=self._half_off_start,
            half_off_step=self._half_off_step)

        out = pl.pallas_call(
            kernel,
            out_shape=jax.ShapeDtypeStruct((n, k), self.out_dtype),
            grid_spec=pltpu.PrefetchScalarGridSpec(
                num_scalar_prefetch=0,
                grid=(grid,),
                in_specs=[pl.BlockSpec((1, 1, tile), lambda i: (i, 0, 0))],
                out_specs=pl.BlockSpec((tile, k), lambda i: (i, 0)),
            ),
            compiler_params=pltpu.CompilerParams(
                dimension_semantics=("parallel",),
                vmem_limit_bytes=48 << 20),
        )(dist_rows)

        return out                                            # (N, K)


if __name__ == "__main__":
    key = jax.random.PRNGKey(0)
    # Small input consistent with the module: arbitrary-shaped distances.
    dist = jax.random.uniform(key, (8, 16), dtype=jnp.float32,
                              minval=-5.0, maxval=5.0)

    module = SigmoidSmearing(start=-5.0, stop=5.0, num_sigmoid=50,
                             basis_width_scalar=1.0)
    out = module(dist)
    out = jax.block_until_ready(out)

    # Reference check (plain JAX) against the exact PyTorch formula.
    ref = jax.nn.sigmoid(
        module.coeff * (jnp.reshape(dist, (-1, 1)) -
                        jnp.reshape(module.offset, (1, -1))))
    assert out.shape == (dist.size, 50)
    # tanh-form sigmoid + analytic in-kernel offsets: identical math, only
    # f32 ULP-level differences vs the linspace/sigmoid reference.
    assert jnp.allclose(out, ref, atol=2e-5, rtol=1e-5), \
        float(jnp.max(jnp.abs(out - ref)))

    print("KERNEL_OK")
</pallas_src>

<mosaic_0001>
module attributes {stable_mosaic.version = 11 : i64} {
  func.func @_sigmoid_smearing_kernel(%arg0: i32, %arg1: memref<1x1x128xf32, #tpu.memory_space<vmem>>, %arg2: memref<128x50xf32, #tpu.memory_space<vmem>>) attributes {dimension_semantics = [#tpu.dimension_semantics<parallel>], iteration_bounds = array<i64: 1>, scalar_prefetch = 0 : i64, scratch_operands = 0 : i64, tpu.core_type = #tpu.core_type<tc>, window_params = [{transform_indices = @transform_0, window_bounds = array<i64: 1, 1, 128>}, {transform_indices = @transform_1, window_bounds = array<i64: 128, 50>}]} {
    %c0 = arith.constant 0 : index
    %c0_0 = arith.constant 0 : index
    %c0_1 = arith.constant 0 : index
    %0 = vector.load %arg1[%c0, %c0_0, %c0_1] : memref<1x1x128xf32, #tpu.memory_space<vmem>>, vector<1x1x128xf32>
    %1 = vector.shape_cast %0 : vector<1x1x128xf32> to vector<1x128xf32>
    %cst = arith.constant 2.45000124 : f32
    %2 = vector.broadcast %cst : f32 to vector<1x128xf32>
    %3 = arith.mulf %1, %2 : vector<1x128xf32>
    %4 = tpu.transpose %3, [1, 0] : vector<1x128xf32> -> vector<128x1xf32>
    %5 = tpu.iota {dimensions = array<i32: 1>} : vector<1x50xi32>
    %6 = arith.sitofp %5 : vector<1x50xi32> to vector<1x50xf32>
    %cst_2 = arith.constant 0.500000238 : f32
    %7 = vector.broadcast %cst_2 : f32 to vector<1x50xf32>
    %8 = arith.mulf %7, %6 : vector<1x50xf32>
    %cst_3 = arith.constant -12.2500057 : f32
    %9 = vector.broadcast %cst_3 : f32 to vector<1x50xf32>
    %10 = arith.addf %9, %8 : vector<1x50xf32>
    %11 = vector.broadcast %4 : vector<128x1xf32> to vector<128x50xf32>
    %12 = vector.broadcast %10 : vector<1x50xf32> to vector<128x50xf32>
    %13 = arith.subf %11, %12 : vector<128x50xf32>
    %14 = math.tanh %13 : vector<128x50xf32>
    %cst_4 = arith.constant 5.000000e-01 : f32
    %15 = vector.broadcast %cst_4 : f32 to vector<128x50xf32>
    %16 = arith.mulf %15, %14 : vector<128x50xf32>
    %cst_5 = arith.constant 5.000000e-01 : f32
    %17 = vector.broadcast %cst_5 : f32 to vector<128x50xf32>
    %18 = arith.addf %16, %17 : vector<128x50xf32>
    %c0_6 = arith.constant 0 : index
    %c0_7 = arith.constant 0 : index
    %19 = vector.load %arg2[%c0_6, %c0_7] : memref<128x50xf32, #tpu.memory_space<vmem>>, vector<128x50xf32>
    tpu.vector_store %arg2[%c0_6, %c0_7], %18 {strides = array<i32>} : memref<128x50xf32, #tpu.memory_space<vmem>>, vector<128x50xf32>,
    return
  }
  func.func @transform_0(%arg0: i32) -> (i32, i32, i32) {
    %c0_i32 = arith.constant 0 : i32
    %c0_i32_0 = arith.constant 0 : i32
    %c0_i32_1 = arith.constant 0 : i32
    return %arg0, %c0_i32, %c0_i32_0 : i32, i32, i32
  }
  func.func @transform_1(%arg0: i32) -> (i32, i32) {
    %c0_i32 = arith.constant 0 : i32
    %c0_i32_0 = arith.constant 0 : i32
    return %arg0, %c0_i32 : i32, i32
  }
}

</mosaic_0001>

<bundles_post_ra>
// kernel: tpu_custom_call.1
= control target key start
LH: loop header
LB: loop body
LE: loop exit
PB: predicated region body
PF: predicated region fallthrough
CT: control target
= control target key end

     0   :  { %6 = vsyncpa [#allocation3], 0  ;;  %s286_s6 = smov [#allocation2]   ;;  %s392_s0 = inlined_call_operand.hbm [shape: f32[1,1,128], index: 0, kind: input, shape index: {}]   ;;  %s393_s1 = inlined_call_operand.vmem [shape: f32[128,50], index: 1, kind: output, shape index: {}]  }
   0x1   :  { %s13_s7 = sshll.u32 %s286_s6, 4  ;;  %s262_s10 = scalar_lea.hbm %s392_s0, 16  ;;  %s14_s7 = int_to_ptr.vmem [resolvable:$true] %s13_s7 }
   0x2   :  { %p263_p0 = scmp.ne.s32.totalorder %s392_s0, %s262_s10  ;;  %p266_p1 = scmp.lt.u32.totalorder %s262_s10, %s392_s0 }
   0x4   :  { %p268_p2 = pnand %p266_p1, %p263_p0 }
   0x6   :  { %271 = shalt.err (!%p268_p2)
}
   0x7   :  { %s272_s15 = scalar_lea.vmem %s14_s7, 16  ;;  %s276_s16 = scalar_lea.vmem %s14_s7, 32 }
   0x8   :  { %p273_p3 = scmp.ne.s32.totalorder %s14_s7, %s272_s15  ;;  %p277_p4 = scmp.lt.s32.totalorder %s14_s7, %s14_s7 }
   0x9   :  { %p278_p5 = scmp.lt.s32.totalorder %s276_s16, %s272_s15 }
   0xb   :  { %p279_p6 = por %p278_p5, %p277_p4 }
   0xd   :  { %p280_p7 = pnand %p279_p6, %p273_p3 }
   0xf   :  { %283 = shalt.err (!%p280_p7)
}
  0x10   :  { %16 = dma.hbm_to_vmem [thread:$0]  %s392_s0, 16, %s14_s7, [#allocation3]  }
  0x11   :  { %284 = dma.done.wait [#allocation3], 16  }
  0x12   :  { %285 = vsyncadd [#allocation3], 4294967280  ;;  %v287_v0 = vmov 0   ;;  %v20_v1 = vld [vmem:[#allocation2] sm:$0x1]  ;;  %v54_v19 = vlaneseq  ;;  %vm203_vm0 = vcmask 408576  }
  0x13   :  { %229 = vset.pattern.permute.xlu1 %v287_v0  ;;  %v21_v2 = vmul.f32 2.4500012, %v20_v1 }
  0x14   :  { %v55_v20 = vand.u32 127, %v54_v19 }
  0x15   :  { %22 = vxpose.xlu0.b32.start.end [1/1] (short) %v21_v2, 128 }
  0x16   :  { %v56_v21 = vcvt.s32.f32 %v55_v20 }
  0x18   :  { %v57_v22 = vmul.f32 0.50000024, %v56_v21 }
  0x1a   :  { %v310_v23 = vadd.f32 -12.250006, %v57_v22 }
  0x3e   :  { %228 = vset.pattern.permute.xlu0 %v287_v0 }
  0x95   :  { %v38_v3 = vpop.trf.xlu0 }
  0x96   :  { %61 = vperm.xlu0 %228, %v38_v3  }
  0x99   :  { %v39_v4 = vpop.trf.xlu0 }
  0x9a   :  { %66 = vperm.xlu1 %229, %v39_v4  }
  0x9d   :  { %v40_v5 = vpop.trf.xlu0 }
  0x9e   :  { %71 = vperm.xlu1 %229, %v40_v5  }
  0xa1   :  { %v41_v6 = vpop.trf.xlu0 }
  0xa2   :  { %76 = vperm.xlu1 %229, %v41_v6  }
  0xa5   :  { %v42_v7 = vpop.trf.xlu0 }
  0xa6   :  { %81 = vperm.xlu1 %229, %v42_v7  }
  0xa9   :  { %v43_v8 = vpop.trf.xlu0 }
  0xaa   :  { %86 = vperm.xlu1 %229, %v43_v8  }
  0xad   :  { %v44_v9 = vpop.trf.xlu0 }
  0xae   :  { %91 = vperm.xlu1 %229, %v44_v9  }
  0xb1   :  { %v45_v10 = vpop.trf.xlu0 }
  0xb2   :  { %96 = vperm.xlu1 %229, %v45_v10  }
  0xb5   :  { %v46_v11 = vpop.trf.xlu0 }
  0xb6   :  { %101 = vperm.xlu1 %229, %v46_v11  }
  0xb9   :  { %v47_v12 = vpop.trf.xlu0 }
  0xba   :  { %106 = vperm.xlu1 %229, %v47_v12  }
  0xbd   :  { %v48_v13 = vpop.trf.xlu0 }
  0xbe   :  { %111 = vperm.xlu1 %229, %v48_v13  }
  0xc1   :  { %v49_v14 = vpop.trf.xlu0 }
  0xc2   :  { %116 = vperm.xlu1 %229, %v49_v14  }
  0xc5   :  { %v50_v15 = vpop.trf.xlu0 }
  0xc6   :  { %121 = vperm.xlu1 %229, %v50_v15  }
  0xc9   :  { %v51_v16 = vpop.trf.xlu0 }
  0xca   :  { %126 = vperm.xlu1 %229, %v51_v16  }
  0xcd   :  { %v52_v17 = vpop.trf.xlu0 }
  0xce   :  { %131 = vperm.xlu1 %229, %v52_v17  }
  0xd1   :  { %v53_v18 = vpop.trf.xlu0 }
  0xd2   :  { %136 = vperm.xlu1 %229, %v53_v18  }
 0x115   :  { %v62_v24 = vpop.permute.xlu0 %61 }
 0x116   :  { %v139_v25 = vsub.f32 %v62_v24, %v310_v23 }
 0x118   :  { %230 = vtanh.f32 %v139_v25 }
 0x119   :  { %v67_v26 = vpop.permute.xlu1 %66 }
 0x11a   :  { %v140_v27 = vsub.f32 %v67_v26, %v310_v23 }
 0x11c   :  { %232 = vtanh.f32 %v140_v27 }
 0x11d   :  { %v72_v28 = vpop.permute.xlu1 %71 }
 0x11e   :  { %v141_v29 = vsub.f32 %v72_v28, %v310_v23 }
 0x120   :  { %234 = vtanh.f32 %v141_v29 }
 0x121   :  { %v77_v30 = vpop.permute.xlu1 %76 }
 0x122   :  { %v231_v31 = vpop.eup %230  ;;  %v142_v32 = vsub.f32 %v77_v30, %v310_v23 }
 0x123   :  { %v171_v33 = vmul.f32 0.5, %v231_v31 }
 0x124   :  { %236 = vtanh.f32 %v142_v32 }
 0x125   :  { %v187_v34 = vadd.f32 0.5, %v171_v33  ;;  %v82_v35 = vpop.permute.xlu1 %81 }
 0x126   :  { %v233_v36 = vpop.eup %232  ;;  %v143_v37 = vsub.f32 %v82_v35, %v310_v23 }
 0x127   :  { %204 = vst.msk [vmem:[%s393_s1] sm:$0xff] %vm203_vm0, %v187_v34  ;;  %v172_v38 = vmul.f32 0.5, %v233_v36 }
 0x128   :  { %238 = vtanh.f32 %v143_v37 }
 0x129   :  { %v188_v39 = vadd.f32 0.5, %v172_v38  ;;  %v87_v40 = vpop.permute.xlu1 %86 }
 0x12a   :  { %v235_v41 = vpop.eup %234  ;;  %v144_v42 = vsub.f32 %v87_v40, %v310_v23 }
 0x12b   :  { %205 = vst.msk [vmem:[%s393_s1 + $0x8] sm:$0xff] %vm203_vm0, %v188_v39  ;;  %v173_v43 = vmul.f32 0.5, %v235_v41 }
 0x12c   :  { %240 = vtanh.f32 %v144_v42 }
 0x12d   :  { %v189_v44 = vadd.f32 0.5, %v173_v43  ;;  %v92_v45 = vpop.permute.xlu1 %91 }
 0x12e   :  { %v237_v46 = vpop.eup %236  ;;  %v145_v47 = vsub.f32 %v92_v45, %v310_v23 }
 0x12f   :  { %206 = vst.msk [vmem:[%s393_s1 + $0x10] sm:$0xff] %vm203_vm0, %v189_v44  ;;  %v174_v48 = vmul.f32 0.5, %v237_v46 }
 0x130   :  { %242 = vtanh.f32 %v145_v47 }
 0x131   :  { %v190_v49 = vadd.f32 0.5, %v174_v48  ;;  %v97_v50 = vpop.permute.xlu1 %96 }
 0x132   :  { %v239_v51 = vpop.eup %238  ;;  %v146_v52 = vsub.f32 %v97_v50, %v310_v23 }
 0x133   :  { %207 = vst.msk [vmem:[%s393_s1 + $0x18] sm:$0xff] %vm203_vm0, %v190_v49  ;;  %v175_v53 = vmul.f32 0.5, %v239_v51 }
 0x134   :  { %244 = vtanh.f32 %v146_v52 }
 0x135   :  { %v191_v54 = vadd.f32 0.5, %v175_v53  ;;  %v102_v55 = vpop.permute.xlu1 %101 }
 0x136   :  { %v241_v56 = vpop.eup %240  ;;  %v147_v57 = vsub.f32 %v102_v55, %v310_v23 }
 0x137   :  { %208 = vst.msk [vmem:[%s393_s1 + $0x20] sm:$0xff] %vm203_vm0, %v191_v54  ;;  %v176_v58 = vmul.f32 0.5, %v241_v56 }
 0x138   :  { %246 = vtanh.f32 %v147_v57 }
 0x139   :  { %v192_v59 = vadd.f32 0.5, %v176_v58  ;;  %v107_v60 = vpop.permute.xlu1 %106 }
 0x13a   :  { %v243_v61 = vpop.eup %242  ;;  %v148_v62 = vsub.f32 %v107_v60, %v310_v23 }
 0x13b   :  { %209 = vst.msk [vmem:[%s393_s1 + $0x28] sm:$0xff] %vm203_vm0, %v192_v59  ;;  %v177_v63 = vmul.f32 0.5, %v243_v61 }
 0x13c   :  { %248 = vtanh.f32 %v148_v62 }
 0x13d   :  { %v193_v0 = vadd.f32 0.5, %v177_v63  ;;  %v112_v1 = vpop.permute.xlu1 %111 }
 0x13e   :  { %v245_v2 = vpop.eup %244  ;;  %v149_v3 = vsub.f32 %v112_v1, %v310_v23 }
 0x13f   :  { %210 = vst.msk [vmem:[%s393_s1 + $0x30] sm:$0xff] %vm203_vm0, %v193_v0  ;;  %v178_v4 = vmul.f32 0.5, %v245_v2 }
 0x140   :  { %250 = vtanh.f32 %v149_v3 }
 0x141   :  { %v194_v5 = vadd.f32 0.5, %v178_v4  ;;  %v117_v6 = vpop.permute.xlu1 %116 }
 0x142   :  { %v247_v7 = vpop.eup %246  ;;  %v150_v8 = vsub.f32 %v117_v6, %v310_v23 }
 0x143   :  { %211 = vst.msk [vmem:[%s393_s1 + $0x38] sm:$0xff] %vm203_vm0, %v194_v5  ;;  %v179_v9 = vmul.f32 0.5, %v247_v7 }
 0x144   :  { %252 = vtanh.f32 %v150_v8 }
 0x145   :  { %v195_v10 = vadd.f32 0.5, %v179_v9  ;;  %v122_v11 = vpop.permute.xlu1 %121 }
 0x146   :  { %v249_v12 = vpop.eup %248  ;;  %v151_v13 = vsub.f32 %v122_v11, %v310_v23 }
 0x147   :  { %212 = vst.msk [vmem:[%s393_s1 + $0x40] sm:$0xff] %vm203_vm0, %v195_v10  ;;  %v180_v14 = vmul.f32 0.5, %v249_v12 }
 0x148   :  { %254 = vtanh.f32 %v151_v13 }
 0x149   :  { %v196_v15 = vadd.f32 0.5, %v180_v14  ;;  %v127_v16 = vpop.permute.xlu1 %126 }
 0x14a   :  { %v251_v17 = vpop.eup %250  ;;  %v152_v18 = vsub.f32 %v127_v16, %v310_v23 }
 0x14b   :  { %213 = vst.msk [vmem:[%s393_s1 + $0x48] sm:$0xff] %vm203_vm0, %v196_v15  ;;  %v181_v19 = vmul.f32 0.5, %v251_v17 }
 0x14c   :  { %256 = vtanh.f32 %v152_v18 }
 0x14d   :  { %v197_v20 = vadd.f32 0.5, %v181_v19  ;;  %v132_v21 = vpop.permute.xlu1 %131 }
 0x14e   :  { %v253_v22 = vpop.eup %252  ;;  %v153_v24 = vsub.f32 %v132_v21, %v310_v23 }
 0x14f   :  { %214 = vst.msk [vmem:[%s393_s1 + $0x50] sm:$0xff] %vm203_vm0, %v197_v20  ;;  %v182_v25 = vmul.f32 0.5, %v253_v22 }
 0x150   :  { %258 = vtanh.f32 %v153_v24 }
 0x151   :  { %v198_v26 = vadd.f32 0.5, %v182_v25  ;;  %v137_v27 = vpop.permute.xlu1 %136 }
 0x152   :  { %v255_v28 = vpop.eup %254  ;;  %v154_v29 = vsub.f32 %v137_v27, %v310_v23 }
 0x153   :  { %215 = vst.msk [vmem:[%s393_s1 + $0x58] sm:$0xff] %vm203_vm0, %v198_v26  ;;  %v183_v30 = vmul.f32 0.5, %v255_v28 }
 0x154   :  { %260 = vtanh.f32 %v154_v29 }
 0x155   :  { %v199_v31 = vadd.f32 0.5, %v183_v30 }
 0x156   :  { %v257_v32 = vpop.eup %256 }
 0x157   :  { %216 = vst.msk [vmem:[%s393_s1 + $0x60] sm:$0xff] %vm203_vm0, %v199_v31  ;;  %v184_v33 = vmul.f32 0.5, %v257_v32 }
 0x159   :  { %v200_v34 = vadd.f32 0.5, %v184_v33 }
 0x15a   :  { %v259_v35 = vpop.eup %258 }
 0x15b   :  { %217 = vst.msk [vmem:[%s393_s1 + $0x68] sm:$0xff] %vm203_vm0, %v200_v34  ;;  %v185_v23 = vmul.f32 0.5, %v259_v35 }
 0x15d   :  { %v201_v36 = vadd.f32 0.5, %v185_v23 }
 0x15e   :  { %v261_v37 = vpop.eup %260 }
 0x15f   :  { %218 = vst.msk [vmem:[%s393_s1 + $0x70] sm:$0xff] %vm203_vm0, %v201_v36  ;;  %v186_v38 = vmul.f32 0.5, %v261_v37 }
 0x161   :  { %v202_v39 = vadd.f32 0.5, %v186_v38 }
 0x163   :  { %219 = vst.msk [vmem:[%s393_s1 + $0x78] sm:$0xff] %vm203_vm0, %v202_v39 }
 0x164   :  { %224 = vsyncpa [#allocation3], 1 }

</bundles_post_ra>
